<compile_context>
chip_gen: v7x
topology: tpu7x:2x2x1
jax: 0.10.0
libtpu: 0.0.40
codegen_flags: <defaults>
</compile_context>

<pallas_src>
import jax
import jax.numpy as jnp
from jax.experimental import pallas as pl
from jax.experimental.pallas import tpu as pltpu  # noqa: F401  (TPU backend)

LANE = 128  # lane-dense output / weight width


# ----------------------------------------------------------------------------
# Kernel: two matmuls + bias add, full-array blocks, no grid.
# ----------------------------------------------------------------------------
def fused_affine_kernel(a_ref, t_ref, wa_ref, wt_ref, b_ref, out_ref):
    acc = jnp.dot(a_ref[...], wa_ref[...], preferred_element_type=jnp.float32)
    acc = acc + jnp.dot(t_ref[...], wt_ref[...],
                        preferred_element_type=jnp.float32)
    out_ref[...] = acc + b_ref[...]          # [1, LANE] broadcast over batch


# ----------------------------------------------------------------------------
# Parameter folding (done once, outside the kernel).
# ----------------------------------------------------------------------------
def fold_params(p):
    """Fold the whole linear chain into (Wa_eff, Wt_eff, b_eff) slabs."""
    m2 = p["w2"] @ p["wvad"]                       # [h0, 3]
    w_a = p["wa"] @ (p["w1a"] @ m2)                # [audio_in, 3]
    w_t = p["wt"] @ (p["w1t"] @ m2)                # [text_in, 3]
    b_eff = (p["ba"] @ (p["w1a"] @ m2)
             + p["bt"] @ (p["w1t"] @ m2)
             + p["b1"] @ m2
             + p["b2"] @ p["wvad"]
             + p["bvad"])                          # [1, 3]

    def lane_pad(w):
        out = jnp.zeros((w.shape[0], LANE), jnp.float32)
        return out.at[:, : w.shape[1]].set(w)      # lanes 3..127 stay 0

    return lane_pad(w_a), lane_pad(w_t), lane_pad(b_eff)


# ----------------------------------------------------------------------------
# Forward wrapper.
# ----------------------------------------------------------------------------
@jax.jit
def mtl_network_forward(audio_input, text_input, wa_slab, wt_slab, b_slab):
    B = audio_input.shape[0]
    audio_input = audio_input.astype(jnp.float32)
    text_input = text_input.astype(jnp.float32)

    out_padded = pl.pallas_call(
        fused_affine_kernel,
        out_shape=jax.ShapeDtypeStruct((B, LANE), jnp.float32),
        in_specs=[
            pl.BlockSpec(audio_input.shape, lambda: (0, 0)),  # audio (full)
            pl.BlockSpec(text_input.shape, lambda: (0, 0)),   # text  (full)
            pl.BlockSpec(wa_slab.shape, lambda: (0, 0)),      # Wa_eff
            pl.BlockSpec(wt_slab.shape, lambda: (0, 0)),      # Wt_eff
            pl.BlockSpec(b_slab.shape, lambda: (0, 0)),       # bias row
        ],
        out_specs=pl.BlockSpec((B, LANE), lambda: (0, 0)),    # lane-dense out
    )(audio_input, text_input, wa_slab, wt_slab, b_slab)

    # Required to match the module's (B, 3) return; costs one tiny XLA slice.
    return out_padded[:, :3]  # (v, a, d)


# ----------------------------------------------------------------------------
# Deterministic parameter init (PyTorch-style uniform(-1/sqrt(fan_in), ..)).
# ----------------------------------------------------------------------------
def init_params(key, audio_in, text_in, audio_feat, text_feat, hidden):
    h0, h1 = hidden

    def linear(key, fan_in, fan_out):
        kw, kb = jax.random.split(key)
        bound = 1.0 / jnp.sqrt(jnp.float32(fan_in))
        w = jax.random.uniform(kw, (fan_in, fan_out), jnp.float32, -bound, bound)
        b = jax.random.uniform(kb, (1, fan_out), jnp.float32, -bound, bound)
        return w, b

    keys = jax.random.split(key, 7)
    wa, ba = linear(keys[0], audio_in, audio_feat)
    wt, bt = linear(keys[1], text_in, text_feat)
    w1, b1 = linear(keys[2], audio_feat + text_feat, h0)
    w2, b2 = linear(keys[3], h0, h1)
    wv, bv = linear(keys[4], h1, 1)
    wA, bA = linear(keys[5], h1, 1)
    wd, bd = linear(keys[6], h1, 1)

    return {
        "wa": wa, "ba": ba,
        "wt": wt, "bt": bt,
        # linear1 weight split along its input (concat) axis
        "w1a": w1[:audio_feat, :], "w1t": w1[audio_feat:, :], "b1": b1,
        "w2": w2, "b2": b2,
        # three 1-output heads fused into one [h1, 3] matrix
        "wvad": jnp.concatenate([wv, wA, wd], axis=1),
        "bvad": jnp.concatenate([bv, bA, bd], axis=1),
    }


# ----------------------------------------------------------------------------
# Pure-JAX reference of the UNfused chain (for numerical validation).
# ----------------------------------------------------------------------------
def reference_forward(audio_input, text_input, p):
    a_feat = audio_input @ p["wa"] + p["ba"]
    t_feat = text_input @ p["wt"] + p["bt"]
    x = jnp.concatenate([a_feat, t_feat], axis=1)
    w1 = jnp.concatenate([p["w1a"], p["w1t"]], axis=0)
    h1 = x @ w1 + p["b1"]
    h2 = h1 @ p["w2"] + p["b2"]
    # dropout (eval mode) == identity; relu / leaky_relu never applied
    return h2 @ p["wvad"] + p["bvad"]


if __name__ == "__main__":
    B = 2
    AUDIO_IN, TEXT_IN = 20, 24       # raw input feature dims
    AUDIO_FEAT, TEXT_FEAT = 16, 16   # sub-net output dims -> input_size = 32
    HIDDEN = (32, 16)                # hidden_size[0], hidden_size[1]

    key = jax.random.PRNGKey(0)
    k_a, k_t, k_p = jax.random.split(key, 3)
    audio_input = jax.random.normal(k_a, (B, AUDIO_IN), jnp.float32)
    text_input = jax.random.normal(k_t, (B, TEXT_IN), jnp.float32)

    params = init_params(k_p, AUDIO_IN, TEXT_IN, AUDIO_FEAT, TEXT_FEAT, HIDDEN)
    wa_slab, wt_slab, b_slab = jax.block_until_ready(fold_params(params))

    out = mtl_network_forward(audio_input, text_input, wa_slab, wt_slab, b_slab)
    out = jax.block_until_ready(out)

    ref = reference_forward(audio_input, text_input, params)
    assert out.shape == (B, 3), out.shape
    assert jnp.allclose(out, ref, atol=1e-4, rtol=1e-4), (out, ref)

    print("KERNEL_OK")
</pallas_src>

<mosaic_0001>
module attributes {stable_mosaic.version = 11 : i64} {
  func.func @fused_affine_kernel(%arg0: memref<2x20xf32, #tpu.memory_space<vmem>>, %arg1: memref<2x24xf32, #tpu.memory_space<vmem>>, %arg2: memref<20x128xf32, #tpu.memory_space<vmem>>, %arg3: memref<24x128xf32, #tpu.memory_space<vmem>>, %arg4: memref<1x128xf32, #tpu.memory_space<vmem>>, %arg5: memref<2x128xf32, #tpu.memory_space<vmem>>) attributes {dimension_semantics = [], scalar_prefetch = 0 : i64, scratch_operands = 0 : i64, tpu.core_type = #tpu.core_type<tc>} {
    %c0 = arith.constant 0 : index
    %c0_0 = arith.constant 0 : index
    %0 = vector.load %arg0[%c0, %c0_0] : memref<2x20xf32, #tpu.memory_space<vmem>>, vector<2x20xf32>
    %c0_1 = arith.constant 0 : index
    %c0_2 = arith.constant 0 : index
    %1 = vector.load %arg2[%c0_1, %c0_2] : memref<20x128xf32, #tpu.memory_space<vmem>>, vector<20x128xf32>
    %cst = arith.constant dense<0.000000e+00> : vector<2x128xf32>
    %2 = tpu.matmul %0, %1, %cst {dimension_numbers = #tpu.dot_dimension_numbers<[1], [0], [0], [1], [0, 0, 1, 1], [], []>} : vector<2x20xf32>, vector<20x128xf32>, vector<2x128xf32> -> vector<2x128xf32>
    %c0_3 = arith.constant 0 : index
    %c0_4 = arith.constant 0 : index
    %3 = vector.load %arg1[%c0_3, %c0_4] : memref<2x24xf32, #tpu.memory_space<vmem>>, vector<2x24xf32>
    %c0_5 = arith.constant 0 : index
    %c0_6 = arith.constant 0 : index
    %4 = vector.load %arg3[%c0_5, %c0_6] : memref<24x128xf32, #tpu.memory_space<vmem>>, vector<24x128xf32>
    %cst_7 = arith.constant dense<0.000000e+00> : vector<2x128xf32>
    %5 = tpu.matmul %3, %4, %cst_7 {dimension_numbers = #tpu.dot_dimension_numbers<[1], [0], [0], [1], [0, 0, 1, 1], [], []>} : vector<2x24xf32>, vector<24x128xf32>, vector<2x128xf32> -> vector<2x128xf32>
    %6 = arith.addf %2, %5 : vector<2x128xf32>
    %c0_8 = arith.constant 0 : index
    %c0_9 = arith.constant 0 : index
    %7 = vector.load %arg4[%c0_8, %c0_9] : memref<1x128xf32, #tpu.memory_space<vmem>>, vector<1x128xf32>
    %8 = vector.broadcast %7 : vector<1x128xf32> to vector<2x128xf32>
    %9 = arith.addf %6, %8 : vector<2x128xf32>
    %c0_10 = arith.constant 0 : index
    %c0_11 = arith.constant 0 : index
    %10 = vector.load %arg5[%c0_10, %c0_11] : memref<2x128xf32, #tpu.memory_space<vmem>>, vector<2x128xf32>
    tpu.vector_store %arg5[%c0_10, %c0_11], %9 {strides = array<i32>} : memref<2x128xf32, #tpu.memory_space<vmem>>, vector<2x128xf32>,
    return
  }
}

</mosaic_0001>

<bundles_post_ra>
// kernel: mtl_network_forward.1
= control target key start
LH: loop header
LB: loop body
LE: loop exit
PB: predicated region body
PF: predicated region fallthrough
CT: control target
= control target key end

     0   :  { %10 = vsyncpa [#allocation3], 0  ;;  %s483_s0 = inlined_call_operand.hbm [shape: f32[2,20], index: 0, kind: input, shape index: {}]   ;;  %s484_s1 = inlined_call_operand.vmem [shape: f32[2,24], index: 1, kind: input, shape index: {}]   ;;  %s485_s2 = inlined_call_operand.hbm [shape: f32[20,128], index: 2, kind: input, shape index: {}]   ;;  %s486_s3 = inlined_call_operand.hbm [shape: f32[24,128], index: 3, kind: input, shape index: {}]   ;;  %s487_s4 = inlined_call_operand.vmem [shape: f32[1,128], index: 4, kind: input, shape index: {}]   ;;  %s488_s5 = inlined_call_operand.hbm [shape: f32[2,128], index: 5, kind: output, shape index: {}]  }
   0x1   :  { %11 = vsyncpa [#allocation6], 0 }
   0x2   :  { %12 = vsyncpa [#allocation4], 0  ;;  %s384_s18 = smov [#allocation5]   ;;  %s290_s22 = scalar_lea.hbm %s485_s2, 384 }
   0x3   :  { %s30_s19 = sshll.u32 %s384_s18, 4  ;;  %p291_p0 = scmp.ne.s32.totalorder %s485_s2, %s290_s22  ;;  %s31_s19 = int_to_ptr.vmem [resolvable:$true] %s30_s19 }
   0x4   :  { %p294_p1 = scmp.lt.u32.totalorder %s290_s22, %s485_s2 }
   0x6   :  { %p296_p2 = pnand %p294_p1, %p291_p0 }
   0x8   :  { %299 = shalt.err (!%p296_p2)
}
   0x9   :  { %s300_s27 = scalar_lea.vmem %s31_s19, 384  ;;  %p305_p4 = scmp.lt.s32.totalorder %s31_s19, %s31_s19 }
   0xa   :  { %p301_p3 = scmp.ne.s32.totalorder %s31_s19, %s300_s27  ;;  %p306_p5 = scmp.lt.s32.totalorder %s300_s27, %s300_s27 }
   0xc   :  { %p307_p6 = por %p306_p5, %p305_p4 }
   0xe   :  { %p308_p7 = pnand %p307_p6, %p301_p3 }
  0x10   :  { %311 = shalt.err (!%p308_p7)
}
  0x11   :  { %s385_s28 = smov 128   ;;  %s386_s29 = smov 8  }
  0x12   :  { %36 = dma.hbm_to_vmem [thread:$0]  %s485_s2, 384, %s31_s19, [#allocation6], %s385_s28, %s385_s28, %s386_s29  }
  0x13   :  { %s387_s7 = smov [#allocation2]   ;;  %s388_s9 = smov [#allocation7]  }
  0x14   :  { %s19_s8 = sshll.u32 %s387_s7, 4  ;;  %s42_s10 = sshll.u32 %s388_s9, 4  ;;  %s20_s8 = int_to_ptr.vmem [resolvable:$true] %s19_s8  ;;  %s43_s10 = int_to_ptr.vmem [resolvable:$true] %s42_s10 }
  0x15   :  { %s312_s13 = scalar_lea.hbm %s483_s0, 32 }
  0x16   :  { %p313_p8 = scmp.ne.s32.totalorder %s483_s0, %s312_s13  ;;  %p316_p9 = scmp.lt.u32.totalorder %s312_s13, %s483_s0 }
  0x18   :  { %p318_p10 = pnand %p316_p9, %p313_p8 }
  0x1a   :  { %321 = shalt.err (!%p318_p10)
}
  0x1b   :  { %s322_s2 = scalar_lea.vmem %s20_s8, 32  ;;  %p327_p12 = scmp.lt.s32.totalorder %s20_s8, %s20_s8 }
  0x1c   :  { %p323_p11 = scmp.ne.s32.totalorder %s20_s8, %s322_s2  ;;  %p328_p13 = scmp.lt.s32.totalorder %s322_s2, %s322_s2 }
  0x1e   :  { %p329_p0 = por %p328_p13, %p327_p12 }
  0x20   :  { %p330_p1 = pnand %p329_p0, %p323_p11 }
  0x22   :  { %333 = shalt.err (!%p330_p1)
}
  0x23   :  { %22 = dma.hbm_to_vmem [thread:$0]  %s483_s0, 32, %s20_s8, [#allocation3]  }
  0x24   :  { %s334_s22 = scalar_lea.hbm %s486_s3, 384 }
  0x25   :  { %p335_p2 = scmp.ne.s32.totalorder %s486_s3, %s334_s22  ;;  %p338_p3 = scmp.lt.u32.totalorder %s334_s22, %s486_s3 }
  0x27   :  { %p340_p4 = pnand %p338_p3, %p335_p2 }
  0x29   :  { %343 = shalt.err (!%p340_p4)
}
  0x2a   :  { %s344_s27 = scalar_lea.vmem %s43_s10, 384  ;;  %p349_p6 = scmp.lt.s32.totalorder %s43_s10, %s43_s10 }
  0x2b   :  { %p345_p5 = scmp.ne.s32.totalorder %s43_s10, %s344_s27  ;;  %p350_p7 = scmp.lt.s32.totalorder %s344_s27, %s344_s27 }
  0x2d   :  { %p351_p8 = por %p350_p7, %p349_p6 }
  0x2f   :  { %p352_p9 = pnand %p351_p8, %p345_p5 }
  0x31   :  { %355 = shalt.err (!%p352_p9)
}
  0x32   :  { %48 = dma.hbm_to_vmem [thread:$0]  %s486_s3, 384, %s43_s10, [#allocation6], %s385_s28, %s385_s28, %s386_s29  }
  0x33   :  { %378 = dma.done.wait [#allocation3], 32  }
  0x34   :  { %379 = vsyncadd [#allocation3], 4294967264 }
  0x35   :  { %380 = dma.done.wait [#allocation6], 768  }
  0x36   :  { %381 = vsyncadd [#allocation6], 4294966528  ;;  %v389_v0 = vmov 0.0|0.0   ;;  %vm390_vm0 = vmmov 0   ;;  %v391_v1 = vmov 0.0   ;;  %v65_v2 = vld [vmem:[#allocation7] sm:$0xff] }
  0x37   :  { %275 = vmatprep.subr.bf16.mxu0 %v389_v0  ;;  %278 = vmatprep.subr.bf16.mxu1 %v389_v0  ;;  %v66_v3 = vld [vmem:[#allocation7 + $0x8] sm:$0xff]  ;;  %v62_v6 = vld [vmem:[#allocation5 + $0x8] sm:$0xff]  ;;  %v63_v9 = vld [vmem:[#allocation5 + $0x10] sm:$0xf]  ;;  %vm146_vm1 = vcmask 1043456   ;;  %vm68_vm2 = vcmask 195584  }
  0x38   :  { %263 = vmatprep.mubr.msk.f32.mxu0 %vm390_vm0, %v391_v1  ;;  %272 = vmatprep.mubr.msk.f32.mxu1 %vm390_vm0, %v391_v1  ;;  %v61_v4 = vld [vmem:[#allocation5] sm:$0xff]  ;;  %v276_v5 = vpack.c.bf16 %v66_v3, %v65_v2  ;;  %v67_v8 = vld [vmem:[#allocation7 + $0x10] sm:$0xff]  ;;  %v64_v10 = vld [vmem:[%s484_s1] sm:$0x3]  ;;  %vm142_vm3 = vcmask 162816   ;;  %s392_s7 = smov [#allocation8]  }
  0x39   :  { %v279_v7 = vpack.c.bf16 %v62_v6, %v61_v4  ;;  %v60_v11 = vld [vmem:[#allocation2] sm:$0x3]  ;;  %s235_s8 = sshll.u32 %s392_s7, 4  ;;  %s236_s8 = int_to_ptr.vmem [resolvable:$true] %s235_s8 }
  0x3a   :  { %277 = vmatpush3.bf16.msra.mxu0 %v276_v5  ;;  %v248_v14 = vld [vmem:[%s487_s4] ss:$0 sm:$0xff]  ;;  %s356_s1 = scalar_lea.vmem %s236_s8, 32  ;;  %p361_p11 = scmp.lt.s32.totalorder %s236_s8, %s236_s8 }
  0x3b   :  { %280 = vmatpush3.bf16.msra.mxu1 %v279_v7  ;;  %261 = vmatprep.subr.mxu0 %v391_v1  ;;  %p357_p10 = scmp.ne.s32.totalorder %s236_s8, %s356_s1  ;;  %p362_p12 = scmp.lt.s32.totalorder %s356_s1, %s356_s1 }
  0x3c   :  { %270 = vmatprep.subr.mxu1 %v391_v1 }
  0x3d   :  { %p363_p13 = por %p362_p12, %p361_p11 }
  0x3e   :  { %262 = vmatpush3.msra.mxu0 %v67_v8 }
  0x3f   :  { %271 = vmatpush3.msk.msra.mxu1 %vm146_vm1, %v63_v9  ;;  %264 = vmatmul.mubr.msk.f32.vlgmr.msra.gmra.mrb[0].mxu0 %vm68_vm2, %v64_v10  ;;  %p364_p0 = pnand %p363_p13, %p357_p10 }
  0x40   :  { %273 = vmatmul.mubr.msk.f32.vlgmr.msra.gmra.mrb[0].mxu1 %vm142_vm3, %v60_v11 }
 0x112   :  { %v138_v12 = vpop.f32.mrb[0].mxu0 }
 0x113   :  { %v216_v13 = vpop.f32.mrb[0].mxu1  ;;  %v265_v15 = vpop.f32.mrb[1].mxu0 }
 0x114   :  { %v217_v16 = vadd.f32 %v216_v13, %v138_v12  ;;  %v274_v17 = vpop.f32.mrb[1].mxu1 }
 0x116   :  { %v227_v18 = vadd.f32 %v248_v14, %v217_v16 }
 0x118   :  { %228 = vst [vmem:[#allocation8] sm:$0x3] %v227_v18 }
 0x119   :  { %367 = shalt.err (!%p364_p0)
}
 0x11a   :  { %s368_s11 = scalar_lea.hbm %s488_s5, 32 }
 0x11b   :  { %p369_p1 = scmp.ne.s32.totalorder %s488_s5, %s368_s11  ;;  %p372_p2 = scmp.lt.u32.totalorder %s368_s11, %s488_s5 }
 0x11d   :  { %p374_p3 = pnand %p372_p2, %p369_p1 }
 0x11f   :  { %377 = shalt.err (!%p374_p3)
}
 0x120   :  { %238 = dma.vmem_to_hbm [thread:$0]  %s236_s8, 32, %s488_s5, [#allocation4]  }
 0x121   :  { %382 = dma.done.wait [#allocation4], 32  }
 0x122   :  { %383 = vsyncadd [#allocation4], 4294967264 }
 0x123   :  { %242 = vsyncpa [#allocation3], 1 }
 0x124   :  { %243 = vsyncpa [#allocation6], 1 }
 0x125   :  { %244 = vsyncpa [#allocation4], 1 }

</bundles_post_ra>
